<compile_context>
chip_gen: v7x
topology: tpu7x:2x2x1
jax: 0.10.0
libtpu: 0.0.40
codegen_flags: <defaults>
</compile_context>

<pallas_src>
import jax
import jax.numpy as jnp
from jax.experimental import pallas as pl
from jax.experimental.pallas import tpu as pltpu


def _round_up(n: int, m: int) -> int:
    return (n + m - 1) // m * m


def patch_embed_kernel(x_ref, w_ref, a_ref, o_ref):
    # x_ref: (1, TS, Kp) token rows for one (image, S-tile); row 0 of tile 0 is the
    #        all-zero cls slot, trailing rows are zero padding.
    # w_ref: (Kp, Ep)    patchifier conv weight, reshaped/transposed/zero-padded (resident)
    # a_ref: (TS, Ep)    fused additive term (f32): pos embed (+ conv bias on patch rows,
    #        + cls token on row 0), zero on padded rows/cols.
    # o_ref: (1, TS, Ep)
    acc = jnp.dot(x_ref[0], w_ref[...], preferred_element_type=jnp.float32)
    o_ref[0] = (acc + a_ref[...]).astype(o_ref.dtype)


def patch_embedding(x, conv_w, conv_b, cls_token, pos_embed, *,
                    patch_size, compute_dtype=None, s_tile=256):
    """x: (B, C, H, W); conv_w: (E, C, P, P); conv_b: (E,);
    cls_token: (1, 1, E); pos_embed: (1, NP+1, E).  Returns (B, NP+1, E).

    compute_dtype: optional dtype (e.g. jnp.bfloat16) for the token/weight operands;
    accumulation is always f32 and the output keeps x.dtype.
    """
    B, C, H, W = x.shape
    E = conv_w.shape[0]
    P = patch_size
    assert H % P == 0 and W % P == 0, "spatial dims must be divisible by patch size"
    nh, nw = H // P, W // P
    NP = nh * nw
    S = NP + 1
    K = C * P * P
    assert pos_embed.shape == (1, S, E)

    out_dtype = x.dtype
    cdt = jnp.dtype(out_dtype if compute_dtype is None else compute_dtype)

    # --- alignment / tiling --------------------------------------------------------
    Kp = _round_up(K, 128)              # lane-dense contraction dim
    Ep = _round_up(E, 128)              # lane-dense output dim -> unmasked vst
    S8 = _round_up(S, 8)                # sublane-aligned sequence length
    TS = S8 if S8 <= s_tile else s_tile # S tile (<= 256 caps per-step VMEM)
    Sp = _round_up(S, TS)
    nS = Sp // TS

    # --- wrapper-side layout plumbing ---------------------------------------------
    # space-to-depth: (B, C, H, W) -> (B, NP, K), patch order ih*nw + iw, per-patch
    # flatten order (C, Ph, Pw) to match Conv2d weight memory layout.
    xc = x.astype(cdt)
    patches = (xc.reshape(B, C, nh, P, nw, P)
                 .transpose(0, 2, 4, 1, 3, 5)
                 .reshape(B, NP, K))
    # Single pad folding: leading zero row (cls slot), trailing S-alignment rows,
    # trailing K-alignment cols.  Only one padded (B, Sp, Kp) token tensor is
    # materialized (the pad fuses with the transposing copy above).
    x_tok = jnp.pad(patches, ((0, 0), (1, Sp - S), (0, Kp - K)))

    # (E, C, P, P) -> (Kp, Ep), zero-padded (padded rows/cols contribute nothing).
    w_t = jnp.pad(conv_w.reshape(E, K).T.astype(cdt), ((0, Kp - K), (0, Ep - E)))

    # Fused additive term A (Sp, Ep) in f32 (added onto the f32 accumulator):
    # pos embed everywhere valid, + conv bias on patch rows, + cls token on row 0.
    a = jnp.zeros((Sp, Ep), jnp.float32)
    a = a.at[:S, :E].set(pos_embed.reshape(S, E).astype(jnp.float32))
    a = a.at[1:S, :E].add(conv_b.reshape(1, E).astype(jnp.float32))
    a = a.at[0, :E].add(cls_token.reshape(E).astype(jnp.float32))

    # TODO(synk): nn.Dropout is identity in eval/inference; training-mode dropout
    # (pltpu.prng_seed / prng_random_bits) is not emitted.

    itemsize = jnp.dtype(cdt).itemsize
    cost = pl.CostEstimate(
        flops=2 * B * Sp * Kp * Ep,
        transcendentals=0,
        bytes_accessed=(B * Sp * Kp * itemsize            # tokens
                        + Kp * Ep * itemsize               # weight
                        + Sp * Ep * 4                      # additive term (f32)
                        + B * Sp * Ep * jnp.dtype(out_dtype).itemsize),  # output
    )

    def build(single_buffer_resident: bool):
        res_kw = {"pipeline_mode": pl.Buffered(1)} if single_buffer_resident else {}
        a_kw = res_kw if nS == 1 else {}   # A is only grid-constant when there is one S tile
        return pl.pallas_call(
            patch_embed_kernel,
            out_shape=jax.ShapeDtypeStruct((B, Sp, Ep), out_dtype),
            grid_spec=pltpu.PrefetchScalarGridSpec(
                num_scalar_prefetch=0,
                grid=(B, nS),
                in_specs=[
                    pl.BlockSpec((1, TS, Kp), lambda b, s: (b, s, 0)),        # tokens
                    pl.BlockSpec((Kp, Ep), lambda b, s: (0, 0), **res_kw),    # W^T (resident)
                    pl.BlockSpec((TS, Ep), lambda b, s: (s, 0), **a_kw),      # additive term
                ],
                out_specs=pl.BlockSpec((1, TS, Ep), lambda b, s: (b, s, 0)),
            ),
            compiler_params=pltpu.CompilerParams(
                dimension_semantics=("parallel", "parallel")),
            cost_estimate=cost,
        )

    try:
        out = build(True)(x_tok, w_t, a)
    except Exception:
        # Fallback: some backends/versions may reject single-buffered (Buffered(1))
        # resident BlockSpecs; default double-buffering is always valid.
        out = build(False)(x_tok, w_t, a)

    return out[:, :S, :E]


def reference_patch_embedding(x, conv_w, conv_b, cls_token, pos_embed, *, patch_size):
    """Faithful JAX port of the PyTorch module (eval mode)."""
    P = patch_size
    conv = jax.lax.conv_general_dilated(
        x, conv_w, window_strides=(P, P), padding="VALID",
        dimension_numbers=("NCHW", "OIHW", "NCHW"),
        precision=jax.lax.Precision.HIGHEST)
    conv = conv + conv_b.reshape(1, -1, 1, 1)
    B = x.shape[0]
    E = conv_w.shape[0]
    seq = conv.reshape(B, E, -1).transpose(0, 2, 1)          # (B, NP, E)
    cls = jnp.broadcast_to(cls_token, (B, 1, E))
    return jnp.concatenate([cls, seq], axis=1) + pos_embed   # (B, NP+1, E)


if __name__ == "__main__":
    # Small shapes consistent with the module: batch=2, in_channel=4, 16x16 images,
    # patch_size=4 -> num_patches=16, embed_dim=32, dropout=0.1 (identity in eval).
    B, C, HW, P, E = 2, 4, 16, 4, 32
    NP = (HW // P) * (HW // P)
    S = NP + 1
    K = C * P * P

    key = jax.random.PRNGKey(0)
    kx, kw, kb, kc, kp = jax.random.split(key, 5)

    x = jax.random.normal(kx, (B, C, HW, HW), dtype=jnp.float32)
    conv_w = jax.random.normal(kw, (E, C, P, P), dtype=jnp.float32) * (1.0 / jnp.sqrt(K))
    conv_b = jax.random.normal(kb, (E,), dtype=jnp.float32) * 0.02
    cls_token = jax.random.normal(kc, (1, 1, E), dtype=jnp.float32)
    pos_embed = jax.random.normal(kp, (1, S, E), dtype=jnp.float32)

    ref = reference_patch_embedding(x, conv_w, conv_b, cls_token, pos_embed, patch_size=P)

    # f32 compute path (strict check vs. the HIGHEST-precision JAX reference).
    out = patch_embedding(x, conv_w, conv_b, cls_token, pos_embed, patch_size=P)
    out = jax.block_until_ready(out)
    assert out.shape == (B, S, E)
    assert jnp.allclose(out, ref, atol=1e-4, rtol=1e-4), "f32 Pallas output mismatch"

    # bf16 compute path (halves token/weight HBM bytes; f32 accumulation) — loose check.
    out_bf16 = patch_embedding(x, conv_w, conv_b, cls_token, pos_embed,
                               patch_size=P, compute_dtype=jnp.bfloat16)
    out_bf16 = jax.block_until_ready(out_bf16)
    assert out_bf16.shape == (B, S, E)
    assert jnp.allclose(out_bf16, ref, atol=5e-2, rtol=5e-2), "bf16 Pallas output mismatch"

    print("KERNEL_OK")
</pallas_src>

<mosaic_0001>
module attributes {stable_mosaic.version = 11 : i64} {
  func.func @patch_embed_kernel(%arg0: i32, %arg1: i32, %arg2: memref<1x24x128xf32, #tpu.memory_space<vmem>>, %arg3: memref<128x128xf32, #tpu.memory_space<vmem>>, %arg4: memref<24x128xf32, #tpu.memory_space<vmem>>, %arg5: memref<1x24x128xf32, #tpu.memory_space<vmem>>) attributes {dimension_semantics = [#tpu.dimension_semantics<parallel>, #tpu.dimension_semantics<parallel>], iteration_bounds = array<i64: 2, 1>, scalar_prefetch = 0 : i64, scratch_operands = 0 : i64, tpu.core_type = #tpu.core_type<tc>, window_params = [{transform_indices = @transform_0, window_bounds = array<i64: 1, 24, 128>}, {pipeline_mode = #tpu.pipeline_mode<synchronous>, transform_indices = @transform_1, window_bounds = array<i64: 128, 128>}, {pipeline_mode = #tpu.pipeline_mode<synchronous>, transform_indices = @transform_2, window_bounds = array<i64: 24, 128>}, {transform_indices = @transform_3, window_bounds = array<i64: 1, 24, 128>}]} {
    %c0 = arith.constant 0 : index
    %c0_0 = arith.constant 0 : index
    %c0_1 = arith.constant 0 : index
    %0 = vector.load %arg2[%c0, %c0_0, %c0_1] : memref<1x24x128xf32, #tpu.memory_space<vmem>>, vector<1x24x128xf32>
    %1 = vector.shape_cast %0 : vector<1x24x128xf32> to vector<24x128xf32>
    %c0_2 = arith.constant 0 : index
    %c0_3 = arith.constant 0 : index
    %2 = vector.load %arg3[%c0_2, %c0_3] : memref<128x128xf32, #tpu.memory_space<vmem>>, vector<128x128xf32>
    %cst = arith.constant dense<0.000000e+00> : vector<24x128xf32>
    %3 = tpu.matmul %1, %2, %cst {dimension_numbers = #tpu.dot_dimension_numbers<[1], [0], [0], [1], [0, 0, 1, 1], [], []>} : vector<24x128xf32>, vector<128x128xf32>, vector<24x128xf32> -> vector<24x128xf32>
    %c0_4 = arith.constant 0 : index
    %c0_5 = arith.constant 0 : index
    %4 = vector.load %arg4[%c0_4, %c0_5] : memref<24x128xf32, #tpu.memory_space<vmem>>, vector<24x128xf32>
    %5 = arith.addf %3, %4 : vector<24x128xf32>
    %c0_6 = arith.constant 0 : index
    %c0_7 = arith.constant 0 : index
    %c0_8 = arith.constant 0 : index
    %6 = vector.load %arg5[%c0_6, %c0_7, %c0_8] : memref<1x24x128xf32, #tpu.memory_space<vmem>>, vector<1x24x128xf32>
    %7 = vector.shape_cast %6 : vector<1x24x128xf32> to vector<24x128xf32>
    %8 = vector.shape_cast %5 : vector<24x128xf32> to vector<1x24x128xf32>
    tpu.vector_store %arg5[%c0_6, %c0_7, %c0_8], %8 {strides = array<i32>} : memref<1x24x128xf32, #tpu.memory_space<vmem>>, vector<1x24x128xf32>,
    return
  }
  func.func @transform_0(%arg0: i32, %arg1: i32) -> (i32, i32, i32) {
    %c0_i32 = arith.constant 0 : i32
    %c0_i32_0 = arith.constant 0 : i32
    return %arg0, %arg1, %c0_i32 : i32, i32, i32
  }
  func.func @transform_1(%arg0: i32, %arg1: i32) -> (i32, i32) {
    %c0_i32 = arith.constant 0 : i32
    %c0_i32_0 = arith.constant 0 : i32
    %c0_i32_1 = arith.constant 0 : i32
    return %c0_i32, %c0_i32_0 : i32, i32
  }
  func.func @transform_2(%arg0: i32, %arg1: i32) -> (i32, i32) {
    %c0_i32 = arith.constant 0 : i32
    %c0_i32_0 = arith.constant 0 : i32
    return %arg1, %c0_i32 : i32, i32
  }
  func.func @transform_3(%arg0: i32, %arg1: i32) -> (i32, i32, i32) {
    %c0_i32 = arith.constant 0 : i32
    %c0_i32_0 = arith.constant 0 : i32
    return %arg0, %arg1, %c0_i32 : i32, i32, i32
  }
}

module attributes {stable_mosaic.version = 11 : i64} {
  func.func @patch_embed_kernel(%arg0: i32, %arg1: i32, %arg2: memref<1x24x128xf32, #tpu.memory_space<vmem>>, %arg3: memref<128x128xf32, #tpu.memory_space<vmem>>, %arg4: memref<24x128xf32, #tpu.memory_space<vmem>>, %arg5: memref<1x24x128xf32, #tpu.memory_space<vmem>>) attributes {dimension_semantics = [#tpu.dimension_semantics<parallel>, #tpu.dimension_semantics<parallel>], iteration_bounds = array<i64: 2, 1>, scalar_prefetch = 0 : i64, scratch_operands = 0 : i64, tpu.core_type = #tpu.core_type<tc>, window_params = [{transform_indices = @transform_0, window_bounds = array<i64: 1, 24, 128>}, {pipeline_mode = #tpu.pipeline_mode<synchronous>, transform_indices = @transform_1, window_bounds = array<i64: 128, 128>}, {transform_indices = @transform_2, window_bounds = array<i64: 24, 128>}, {transform_indices = @transform_3, window_bounds = array<i64: 1, 24, 128>}]} {
    %c0 = arith.constant 0 : index
    %c0_0 = arith.constant 0 : index
    %c0_1 = arith.constant 0 : index
    %0 = vector.load %arg2[%c0, %c0_0, %c0_1] : memref<1x24x128xf32, #tpu.memory_space<vmem>>, vector<1x24x128xf32>
    %1 = vector.shape_cast %0 : vector<1x24x128xf32> to vector<24x128xf32>
    %c0_2 = arith.constant 0 : index
    %c0_3 = arith.constant 0 : index
    %2 = vector.load %arg3[%c0_2, %c0_3] : memref<128x128xf32, #tpu.memory_space<vmem>>, vector<128x128xf32>
    %cst = arith.constant dense<0.000000e+00> : vector<24x128xf32>
    %3 = tpu.matmul %1, %2, %cst {dimension_numbers = #tpu.dot_dimension_numbers<[1], [0], [0], [1], [0, 0, 1, 1], [], []>} : vector<24x128xf32>, vector<128x128xf32>, vector<24x128xf32> -> vector<24x128xf32>
    %c0_4 = arith.constant 0 : index
    %c0_5 = arith.constant 0 : index
    %4 = vector.load %arg4[%c0_4, %c0_5] : memref<24x128xf32, #tpu.memory_space<vmem>>, vector<24x128xf32>
    %5 = arith.addf %3, %4 : vector<24x128xf32>
    %c0_6 = arith.constant 0 : index
    %c0_7 = arith.constant 0 : index
    %c0_8 = arith.constant 0 : index
    %6 = vector.load %arg5[%c0_6, %c0_7, %c0_8] : memref<1x24x128xf32, #tpu.memory_space<vmem>>, vector<1x24x128xf32>
    %7 = vector.shape_cast %6 : vector<1x24x128xf32> to vector<24x128xf32>
    %8 = vector.shape_cast %5 : vector<24x128xf32> to vector<1x24x128xf32>
    tpu.vector_store %arg5[%c0_6, %c0_7, %c0_8], %8 {strides = array<i32>} : memref<1x24x128xf32, #tpu.memory_space<vmem>>, vector<1x24x128xf32>,
    return
  }
  func.func @transform_0(%arg0: i32, %arg1: i32) -> (i32, i32, i32) {
    %c0_i32 = arith.constant 0 : i32
    %c0_i32_0 = arith.constant 0 : i32
    return %arg0, %arg1, %c0_i32 : i32, i32, i32
  }
  func.func @transform_1(%arg0: i32, %arg1: i32) -> (i32, i32) {
    %c0_i32 = arith.constant 0 : i32
    %c0_i32_0 = arith.constant 0 : i32
    %c0_i32_1 = arith.constant 0 : i32
    return %c0_i32, %c0_i32_0 : i32, i32
  }
  func.func @transform_2(%arg0: i32, %arg1: i32) -> (i32, i32) {
    %c0_i32 = arith.constant 0 : i32
    %c0_i32_0 = arith.constant 0 : i32
    return %arg1, %c0_i32 : i32, i32
  }
  func.func @transform_3(%arg0: i32, %arg1: i32) -> (i32, i32, i32) {
    %c0_i32 = arith.constant 0 : i32
    %c0_i32_0 = arith.constant 0 : i32
    return %arg0, %arg1, %c0_i32 : i32, i32, i32
  }
}

</mosaic_0001>

<bundles_post_ra>
// kernel: tpu_custom_call.1
= control target key start
LH: loop header
LB: loop body
LE: loop exit
PB: predicated region body
PF: predicated region fallthrough
CT: control target
= control target key end

     0   :  { %8 = vsyncpa [#allocation3], 0  ;;  %s1162_s0 = inlined_call_operand.hbm [shape: f32[2,24,128], index: 0, kind: input, shape index: {}]   ;;  %s1163_s1 = inlined_call_operand.hbm [shape: f32[128,128], index: 1, kind: input, shape index: {}]   ;;  %s1164_s2 = inlined_call_operand.hbm [shape: f32[24,128], index: 2, kind: input, shape index: {}]   ;;  %s1165_s3 = inlined_call_operand.hbm [shape: f32[2,24,128], index: 3, kind: output, shape index: {}]  }
   0x1   :  { %10 = vsyncpa [#allocation3 + $0x1], 0 }
   0x2   :  { %11 = vsyncpa [#allocation6], 0 }
   0x3   :  { %12 = vsyncpa [#allocation4], 0 }
   0x4   :  { %14 = vsyncpa [#allocation4 + $0x1], 0  ;;  %s888_s12 = smov 0   ;;  %s890_s13 = smov 0  }
   0x5   :  { %s892_s14 = smov 0   ;;  %s894_s15 = smov 0  }
   0x6   :  { %s896_s16 = smov 0   ;;  %s898_s17 = smov 0  }
   0x7 LB: > { %s476_s18 = sadd.s32 4294967295, %s855_s17   ;;  %s477_s19 = sadd.s32 4294967294, %s855_s17   ;;  %s855_s17 = sphi %s898_s17, %s20_s17   ;;  %s851_s16 = sphi %s896_s16, %s1187_s16   ;;  %s847_s15 = sphi %s894_s15, %s1186_s15   ;;  %s843_s14 = sphi %s892_s14, %s1185_s14   ;;  %s839_s13 = sphi %s890_s13, %s1184_s13   ;;  %s835_s12 = sphi %s888_s12, %s1183_s12  }
   0x8   : > { %p54_p0 = scmp.ne.s32.totalorder %s839_s13, %s835_s12  ;;  %p922_p1 = scmp.eq.s32.totalorder %s476_s18, 0 }
   0x9   : > { %p926_p2 = scmp.eq.s32.totalorder %s476_s18, 1  ;;  %p133_p3 = scmp.eq.s32.totalorder %s477_s19, 1 }
   0xa   : > { %s1170_s20 = scalar_select %p922_p1, 1, 0 }
   0xb   : > { %p932_p4 = por %p922_p1, %p54_p0  ;;  %p478_p5 = scmp.ge.s32.totalorder %s855_s17, 1 }
   0xc   : > { %p937_p6 = por %p133_p3, %p54_p0  ;;  %p140_p7 = scmp.lt.s32.totalorder %s855_s17, 3 }
   0xd   : > { %s1172_s22 = scalar_select %p932_p4, 1, 0 }
   0xe   : > { %s1173_s23 = scalar_select %p937_p6, 1, 0 }
   0xf   : > { %p942_p8 = pnand %p478_p5, %p140_p7  ;;  %s857_s25 = smov [#allocation5]  }
  0x10   : > { %s152_s26 = sshll.u32 %s857_s25, 4  ;;  %s858_s28 = smov [#allocation7]   ;;  %s946_s26 = int_to_ptr.vmem [resolvable:$true] %s152_s26 }
  0x11   : > { %p605_p9 = pneg %p942_p8  ;;  %s168_s29 = sshll.u32 %s858_s28, 4  ;;  %s957_s29 = int_to_ptr.vmem [resolvable:$true] %s168_s29 }
  0x12   : > { %s683_s5 = scalar_lea.hbm %s1163_s1, 2048 }
  0x13   : > { %p953_p11 = pnand %p605_p9, %p922_p1  ;;  %p684_p12 = scmp.ne.s32.totalorder %s1163_s1, %s683_s5 }
  0x14   : > { %p690_p5 = scmp.lt.u32.totalorder %s683_s5, %s1163_s1 }
  0x15   : > { %p685_p13 = pneg %p953_p11 }
  0x17   : > { %p686_p0 = pnand %p685_p13, %p684_p12 }
  0x19   : > { %p687_p3 = pneg %p686_p0 }
  0x1b   : > { %p692_p7 = pnand %p690_p5, %p687_p3 }
  0x1d   : > { %695 = shalt.err (!%p692_p7)
}
  0x1e   : > { %s696_s10 = scalar_lea.vmem %s946_s26, 2048  ;;  %p704_p1 = scmp.lt.s32.totalorder %s946_s26, %s946_s26 }
  0x1f   : > { %p697_p9 = scmp.ne.s32.totalorder %s946_s26, %s696_s10  ;;  %p705_p12 = scmp.lt.s32.totalorder %s696_s10, %s696_s10 }
  0x21   : > { %p699_p10 = pnand %p697_p9, %p685_p13  ;;  %p706_p0 = por %p705_p12, %p704_p1 }
  0x23   : > { %p700_p6 = pneg %p699_p10 }
  0x25   : > { %p707_p4 = pnand %p706_p0, %p700_p6 }
  0x27   : > { %710 = shalt.err (!%p707_p4)
}
  0x28   : > { %s859_s11 = smov 128   ;;  %s860_s18 = smov 8  }
  0x29   : > { %608 = dma.hbm_to_vmem [thread:$0]  (!%p953_p11), %s1163_s1, 2048, %s946_s26, [#allocation6], %s859_s11, %s859_s11, %s860_s18  }
  0x2a   : > { %s711_s4 = scalar_lea.hbm %s1164_s2, 384 }
  0x2b   : > { %p712_p1 = scmp.ne.s32.totalorder %s1164_s2, %s711_s4  ;;  %p718_p10 = scmp.lt.u32.totalorder %s711_s4, %s1164_s2 }
  0x2d   : > { %p714_p4 = pnand %p712_p1, %p685_p13 }
  0x2f   : > { %p715_p6 = pneg %p714_p4 }
  0x31   : > { %p720_p3 = pnand %p718_p10, %p715_p6 }
  0x33   : > { %723 = shalt.err (!%p720_p3)
}
  0x34   : > { %s724_s26 = scalar_lea.vmem %s957_s29, 384  ;;  %p732_p12 = scmp.lt.s32.totalorder %s957_s29, %s957_s29 }
  0x35   : > { %p725_p5 = scmp.ne.s32.totalorder %s957_s29, %s724_s26  ;;  %p733_p0 = scmp.lt.s32.totalorder %s724_s26, %s724_s26 }
  0x37   : > { %p727_p7 = pnand %p725_p5, %p685_p13  ;;  %p734_p1 = por %p733_p0, %p732_p12 }
  0x39   : > { %p728_p9 = pneg %p727_p7 }
  0x3b   : > { %p735_p4 = pnand %p734_p1, %p728_p9 }
  0x3d   : > { %738 = shalt.err (!%p735_p4)
}
  0x3e   : > { %611 = dma.hbm_to_vmem [thread:$0]  (!%p953_p11), %s1164_s2, 384, %s957_s29, [#allocation6], %s859_s11, %s859_s11, %s860_s18  }
  0x3f   : > { %s32_s27 = sadd.s32 1, %s851_s16  ;;  %s41_s19 = sadd.s32 1, %s843_s14 }
  0x40   : > { %p34_p13 = scmp.ge.s32.totalorder %s32_s27, 2  ;;  %p48_p6 = scmp.ne.s32.totalorder %s843_s14, %s839_s13 }
  0x41   : > { %p49_p10 = scmp.eq.s32.totalorder %s855_s17, 0  ;;  %p622_p3 = scmp.lt.s32.totalorder %s855_s17, 2 }
  0x42   : > { %s1189_s27 = smov (%p34_p13, %s32_s27), 0  ;;  %p1027_p7 = por %p926_p2, %p48_p6 }
  0x43   : > { %p50_p5 = por %p49_p10, %p48_p6  ;;  %s36_s28 = ssub.s32 %s851_s16, %s1189_s27 }
  0x44   : > { %s1176_s25 = scalar_select %p1027_p7, 1, 0 }
  0x45   : > { %s182_s30 = sand.u32 1, %s843_s14   ;;  %p39_p9 = scmp.eq.s32.totalorder %s36_s28, 0 }
  0x46   : > { %s589_s29 = smul.u32 24, %s182_s30  ;;  %p1034_p11 = pnand %p622_p3, %p50_p5 }
  0x47   : > { %s1039_s5 = scalar_select %p39_p9, %s843_s14, %s41_s19  }
  0x48   : > { %s590_s6 = smul.u32 384, %s851_s16  ;;  %s186_s7 = scalar_lea.vmem [#allocation2], %s589_s29 }
  0x49   : > { %s195_s8 = sshll.u32 %s186_s7, 4  ;;  %s1049_s10 = scalar_lea.sflag [#allocation3], %s182_s30  ;;  %s1047_s8 = int_to_ptr.vmem [resolvable:$true] %s195_s8 }
  0x4a   : > { %s1045_s9 = scalar_lea.hbm %s1162_s0, %s590_s6  ;;  %p741_p12 = pneg %p1034_p11 }
  0x4b   : > { %s739_s28 = scalar_lea.hbm %s1045_s9, 384  ;;  %s744_s6 = scalar_lea.hbm %s1162_s0, 768 }
  0x4c   : > { %p740_p2 = scmp.ne.s32.totalorder %s1045_s9, %s739_s28  ;;  %p745_p4 = scmp.lt.u32.totalorder %s1045_s9, %s1162_s0 }
  0x4d   : > { %p746_p13 = scmp.lt.u32.totalorder %s744_s6, %s739_s28  ;;  %p748_p10 = scmp.lt.u32.totalorder %s739_s28, %s1045_s9 }
  0x4e   : > { %p742_p0 = pnand %p741_p12, %p740_p2 }
  0x4f   : > { %p747_p6 = por %p746_p13, %p745_p4 }
  0x50   : > { %p743_p1 = pneg %p742_p0 }
  0x51   : > { %p749_p3 = por %p748_p10, %p747_p6 }
  0x53   : > { %p750_p5 = pnand %p749_p3, %p743_p1 }
  0x55   : > { %753 = shalt.err (!%p750_p5)
}
  0x56   : > { %s754_s30 = scalar_lea.vmem %s1047_s8, 384  ;;  %s861_s26 = smov [#allocation2]  }
  0x57   : > { %p755_p9 = scmp.ne.s32.totalorder %s1047_s8, %s754_s30  ;;  %s759_s19 = sshll.u32 %s861_s26, 4  ;;  %s760_s19 = int_to_ptr.vmem [resolvable:$false] %s759_s19 }
  0x58   : > { %s761_s29 = scalar_lea.vmem %s760_s19, 768  ;;  %p762_p7 = scmp.lt.s32.totalorder %s1047_s8, %s760_s19 }
  0x59   : > { %p757_p2 = pnand %p755_p9, %p741_p12  ;;  %p763_p4 = scmp.lt.s32.totalorder %s761_s29, %s754_s30 }
  0x5b   : > { %p758_p0 = pneg %p757_p2  ;;  %p764_p13 = por %p763_p4, %p762_p7 }
  0x5d   : > { %p765_p6 = pnand %p764_p13, %p758_p0 }
  0x5f   : > { %768 = shalt.err (!%p765_p6)
}
  0x60   : > { %615 = dma.hbm_to_vmem [thread:$0]  (!%p1034_p11), %s1045_s9, 384, %s1047_s8, %s1049_s10, %s859_s11, %s859_s11, %s860_s18  }
  0x61   : > { %207 = sbr.rel (%p942_p8) target bundleno = 376 (0x178), region = 32  ;;  %s1083_s28 = sand.u32 (!%p942_p8), 1, %s839_s13  }
  0x62   : > { %s591_s6 = smul.u32 (!%p942_p8), 24, %s1083_s28  ;;  %s210_s7 = scalar_lea.sflag (!%p942_p8), [#allocation3], %s1083_s28 }
  0x63   : > { %p1178_p7 = scmp.ne.s32.totalorder (!%p942_p8), %s1172_s22, 0 }
  0x64   : > { %s1089_s4 = scalar_lea.vmem (!%p942_p8), [#allocation2], %s591_s6 }
  0x68   : > { %822 = dma.done.wait (%p1178_p7), %s210_s7, 384  }
  0x69   : > { %824 = vsyncadd (%p1178_p7), %s210_s7, 4294966912  ;;  %p1179_p11 = scmp.ne.s32.totalorder %s1170_s20, 0 }
  0x6b   : > { %826 = dma.done.wait (%p1179_p11), [#allocation6], 2432  }
  0x6c   : > { %828 = vsyncadd (%p1179_p11), [#allocation6], 4294964864  ;;  %v862_v0 = vmov 0.0|0.0   ;;  %vm863_vm0 = vmmov 0   ;;  %v864_v1 = vmov 0.0   ;;  %v250_v2 = vld [vmem:[#allocation5] sm:$0xff] }
  0x6d   : > { %573 = vmatprep.subr.bf16.mxu1 %v862_v0  ;;  %549 = vmatprep.subr.bf16.mxu0 %v862_v0  ;;  %v251_v3 = vld [vmem:[#allocation5 + $0x8] sm:$0xff]  ;;  %v252_v4 = vld [vmem:[#allocation5 + $0x10] sm:$0xff]  ;;  %v253_v6 = vld [vmem:[#allocation5 + $0x18] sm:$0xff]  ;;  %s243_s20 = scalar_lea.vmem [#allocation8], %s591_s6  ;;  %s592_s24 = smul.u32 384, %s847_s15 }
  0x6e   : > { %543 = vmatprep.mubr.msk.f32.mxu1 %vm863_vm0, %v864_v1  ;;  %540 = vmatprep.mubr.msk.f32.mxu0 %vm863_vm0, %v864_v1  ;;  %v550_v5 = vpack.c.bf16 %v251_v3, %v250_v2  ;;  %v553_v7 = vpack.c.bf16 %v253_v6, %v252_v4  ;;  %v254_v8 = vld [vmem:[#allocation5 + $0x20] sm:$0xff]  ;;  %v255_v9 = vld [vmem:[#allocation5 + $0x28] sm:$0xff]  ;;  %v256_v11 = vld [vmem:[#allocation5 + $0x30] sm:$0xff]  ;;  %s368_s22 = sshll.u32 %s243_s20, 4  ;;  %s353_s15 = scalar_lea.sflag [#allocation4], %s1083_s28  ;;  %s1108_s22 = int_to_ptr.vmem [resolvable:$true] %s368_s22 }
  0x6f   : > { %v556_v10 = vpack.c.bf16 %v255_v9, %v254_v8  ;;  %v257_v12 = vld [vmem:[#allocation5 + $0x38] sm:$0xff]  ;;  %v258_v14 = vld [vmem:[#allocation5 + $0x40] sm:$0xff]  ;;  %v259_v15 = vld [vmem:[#allocation5 + $0x48] sm:$0xff]  ;;  %s1113_s8 = scalar_lea.hbm %s1165_s3, %s592_s24  ;;  %s769_s9 = scalar_lea.vmem %s1108_s22, 384 }
  0x70   : > { %581 = vmatpush3.bf16.msra.mxu1 %v550_v5  ;;  %551 = vmatpush3.bf16.msra.mxu0 %v550_v5  ;;  %v559_v13 = vpack.c.bf16 %v257_v12, %v256_v11  ;;  %v562_v16 = vpack.c.bf16 %v259_v15, %v258_v14  ;;  %v260_v17 = vld [vmem:[#allocation5 + $0x50] sm:$0xff]  ;;  %v261_v18 = vld [vmem:[#allocation5 + $0x58] sm:$0xff]  ;;  %v262_v20 = vld [vmem:[#allocation5 + $0x60] sm:$0xff]  ;;  %p770_p8 = scmp.ne.s32.totalorder %s1108_s22, %s769_s9  ;;  %p1180_p12 = scmp.ne.s32.totalorder %s1176_s25, 0 }
  0x71   : > { %574 = vmatprep.subr.bf16.mxu1 %v862_v0  ;;  %552 = vmatprep.subr.bf16.mxu0 %v862_v0  ;;  %v565_v19 = vpack.c.bf16 %v261_v18, %v260_v17  ;;  %v263_v21 = vld [vmem:[#allocation5 + $0x68] sm:$0xff]  ;;  %v264_v23 = vld [vmem:[#allocation5 + $0x70] sm:$0xff]  ;;  %v265_v24 = vld [vmem:[#allocation5 + $0x78] sm:$0xff]  ;;  %s865_s10 = smov [#allocation8]  }
  0x72   : > { %v568_v22 = vpack.c.bf16 %v263_v21, %v262_v20  ;;  %v571_v25 = vpack.c.bf16 %v265_v24, %v264_v23  ;;  %v248_v26 = vld [vmem:[%s1089_s4 + $0x8] sm:$0xff]  ;;  %v247_v27 = vld [vmem:[%s1089_s4] sm:$0xff]  ;;  %v249_v28 = vld [vmem:[%s1089_s4 + $0x10] sm:$0xff]  ;;  %p771_p1 = pnand %p770_p8, %p1180_p12  ;;  %s773_s21 = sshll.u32 %s865_s10, 4  ;;  %s774_s21 = int_to_ptr.vmem [resolvable:$false] %s773_s21 }
  0x73   : > { %v267_v29 = vld [vmem:[#allocation7 + $0x8] sm:$0xff]  ;;  %v266_v30 = vld [vmem:[#allocation7] sm:$0xff]  ;;  %v268_v37 = vld [vmem:[#allocation7 + $0x10] sm:$0xff]  ;;  %s775_s30 = scalar_lea.vmem %s774_s21, 768  ;;  %p776_p3 = scmp.lt.s32.totalorder %s1108_s22, %s774_s21 }
  0x74   : > { %582 = vmatpush3.bf16.msra.mxu1 %v553_v7  ;;  %554 = vmatpush3.bf16.msra.mxu0 %v553_v7  ;;  %p772_p10 = pneg %p771_p1  ;;  %p777_p5 = scmp.lt.s32.totalorder %s775_s30, %s769_s9 }
  0x75   : > { %575 = vmatprep.subr.bf16.mxu1 %v862_v0  ;;  %555 = vmatprep.subr.bf16.mxu0 %v862_v0 }
  0x76   : > { %p778_p9 = por %p777_p5, %p776_p3 }
  0x78   : > { %583 = vmatpush3.bf16.msra.mxu1 %v556_v10  ;;  %557 = vmatpush3.bf16.msra.mxu0 %v556_v10  ;;  %p779_p2 = pnand %p778_p9, %p772_p10 }
  0x79   : > { %576 = vmatprep.subr.bf16.mxu1 %v862_v0  ;;  %558 = vmatprep.subr.bf16.mxu0 %v862_v0 }
  0x7c   : > { %584 = vmatpush3.bf16.msra.mxu1 %v559_v13  ;;  %560 = vmatpush3.bf16.msra.mxu0 %v559_v13 }
  0x7d   : > { %577 = vmatprep.subr.bf16.mxu1 %v862_v0  ;;  %561 = vmatprep.subr.bf16.mxu0 %v862_v0 }
  0x80   : > { %585 = vmatpush3.bf16.msra.mxu1 %v562_v16  ;;  %563 = vmatpush3.bf16.msra.mxu0 %v562_v16 }
  0x81   : > { %578 = vmatprep.subr.bf16.mxu1 %v862_v0  ;;  %564 = vmatprep.subr.bf16.mxu0 %v862_v0 }
  0x84   : > { %586 = vmatpush3.bf16.msra.mxu1 %v565_v19  ;;  %566 = vmatpush3.bf16.msra.mxu0 %v565_v19 }
  0x85   : > { %579 = vmatprep.subr.bf16.mxu1 %v862_v0  ;;  %567 = vmatprep.subr.bf16.mxu0 %v862_v0 }
  0x88   : > { %587 = vmatpush3.bf16.msra.mxu1 %v568_v22  ;;  %569 = vmatpush3.bf16.msra.mxu0 %v568_v22 }
  0x89   : > { %580 = vmatprep.subr.bf16.mxu1 %v862_v0  ;;  %570 = vmatprep.subr.bf16.mxu0 %v862_v0 }
  0x8c   : > { %588 = vmatpush3.bf16.msra.mxu1 %v571_v25  ;;  %572 = vmatpush3.bf16.msra.mxu0 %v571_v25 }
  0x8f   : > { %544 = vmatmul.mubr.f32.vlgmr.msra.gmra.mrb[0].mxu1 %v248_v26  ;;  %541 = vmatmul.mubr.f32.vlgmr.msra.gmra.mrb[0].mxu0 %v247_v27 }
  0x90   : > { %546 = vmatprep.mubr.msk.f32.mxu1 %vm863_vm0, %v864_v1 }
  0x93   : > { %547 = vmatmul.mubr.f32.gmra.mrb[2].mxu1 %v249_v28 }
 0x162   : > { %v340_v31 = vpop.f32.mrb[0].mxu1  ;;  %v335_v32 = vpop.f32.mrb[0].mxu0 }
 0x163   : > { %v341_v33 = vadd.f32 %v340_v31, %v267_v29  ;;  %v545_v34 = vpop.f32.mrb[1].mxu1  ;;  %v336_v35 = vadd.f32 %v335_v32, %v266_v30  ;;  %v542_v36 = vpop.f32.mrb[1].mxu0 }
 0x165   : > { %350 = vst [vmem:[%s243_s20 + $0x8] sm:$0xff] %v341_v33  ;;  %349 = vst [vmem:[%s243_s20] sm:$0xff] %v336_v35 }
 0x166   : > { %v345_v38 = vpop.f32.mrb[2].mxu1 }
 0x167   : > { %v346_v39 = vadd.f32 %v345_v38, %v268_v37  ;;  %v548_v40 = vpop.f32.mrb[3].mxu1 }
 0x169   : > { %351 = vst [vmem:[%s243_s20 + $0x10] sm:$0xff] %v346_v39 }
 0x16a   : > { %782 = shalt.err (!%p779_p2)
}
 0x16b   : > { %s783_s26 = scalar_lea.hbm %s1113_s8, 384  ;;  %s787_s6 = scalar_lea.hbm %s1165_s3, 768 }
 0x16c   : > { %p784_p0 = scmp.ne.s32.totalorder %s1113_s8, %s783_s26  ;;  %p788_p6 = scmp.lt.u32.totalorder %s1113_s8, %s1165_s3 }
 0x16d   : > { %p789_p7 = scmp.lt.u32.totalorder %s787_s6, %s783_s26  ;;  %p791_p8 = scmp.lt.u32.totalorder %s783_s26, %s1113_s8 }
 0x16e   : > { %p785_p4 = pnand %p784_p0, %p1180_p12 }
 0x16f   : > { %p790_p11 = por %p789_p7, %p788_p6 }
 0x170   : > { %p786_p13 = pneg %p785_p4 }
 0x171   : > { %p792_p1 = por %p791_p8, %p790_p11 }
 0x173   : > { %p793_p10 = pnand %p792_p1, %p786_p13 }
 0x175   : > { %796 = shalt.err (!%p793_p10)
}
 0x176   : > { %s866_s20 = smov 128   ;;  %s867_s24 = smov 8  }
 0x177   : > { %603 = dma.vmem_to_hbm [thread:$0]  (%p1180_p12), %s1108_s22, 384, %s1113_s8, %s353_s15, %s866_s20, %s866_s20, %s867_s24  }
 0x178 PF: > { %s383_s11 = sand.u32 1, %s835_s12   ;;  %p1181_p3 = scmp.ne.s32.totalorder %s1173_s23, 0 }
 0x179   : > { %p1182_p5 = scmp.ge.s32.totalorder %s855_s17, 2  ;;  %s384_s18 = scalar_lea.sflag [#allocation4], %s383_s11 }
 0x17b   : > { %p617_p9 = pnand %p1182_p5, %p1181_p3 }
 0x17d   : > { %830 = dma.done.wait (!%p617_p9), %s384_s18, 384  }
 0x17e   : > { %832 = vsyncadd (!%p617_p9), %s384_s18, 4294966912  ;;  %s20_s17 = sadd.s32 1, %s855_s17   ;;  %s1183_s12 = smov %s839_s13 }
 0x17f   : > { %p17_p2 = scmp.ge.s32.totalorder %s20_s17, 4   ;;  %s1184_s13 = smov %s843_s14 }
 0x180   : > { %s1185_s14 = smov %s1039_s5  ;;  %s1186_s15 = smov %s851_s16 }
 0x181   : > { %s1187_s16 = smov %s1189_s27  ;;  %19 = sbr.rel (!%p17_p2) target bundleno = 7 (0x7), region = 86 }
 0x188   :  { %389 = vsyncpa [#allocation3], 1 }
 0x189   :  { %391 = vsyncpa [#allocation3 + $0x1], 1 }
 0x18a   :  { %392 = vsyncpa [#allocation6], 1 }
 0x18b   :  { %393 = vsyncpa [#allocation4], 1 }
 0x18c   :  { %395 = vsyncpa [#allocation4 + $0x1], 1 }

// kernel: tpu_custom_call.1
= control target key start
LH: loop header
LB: loop body
LE: loop exit
PB: predicated region body
PF: predicated region fallthrough
CT: control target
= control target key end

     0   :  { %8 = vsyncpa [#allocation3], 0  ;;  %s1162_s0 = inlined_call_operand.hbm [shape: f32[2,24,128], index: 0, kind: input, shape index: {}]   ;;  %s1163_s1 = inlined_call_operand.hbm [shape: f32[128,128], index: 1, kind: input, shape index: {}]   ;;  %s1164_s2 = inlined_call_operand.hbm [shape: f32[24,128], index: 2, kind: input, shape index: {}]   ;;  %s1165_s3 = inlined_call_operand.hbm [shape: f32[2,24,128], index: 3, kind: output, shape index: {}]  }
   0x1   :  { %10 = vsyncpa [#allocation3 + $0x1], 0 }
   0x2   :  { %11 = vsyncpa [#allocation6], 0 }
   0x3   :  { %12 = vsyncpa [#allocation4], 0 }
   0x4   :  { %14 = vsyncpa [#allocation4 + $0x1], 0  ;;  %s888_s12 = smov 0   ;;  %s890_s13 = smov 0  }
   0x5   :  { %s892_s14 = smov 0   ;;  %s894_s15 = smov 0  }
   0x6   :  { %s896_s16 = smov 0   ;;  %s898_s17 = smov 0  }
   0x7 LB: > { %s476_s18 = sadd.s32 4294967295, %s855_s17   ;;  %s477_s19 = sadd.s32 4294967294, %s855_s17   ;;  %s855_s17 = sphi %s898_s17, %s20_s17   ;;  %s851_s16 = sphi %s896_s16, %s1187_s16   ;;  %s847_s15 = sphi %s894_s15, %s1186_s15   ;;  %s843_s14 = sphi %s892_s14, %s1185_s14   ;;  %s839_s13 = sphi %s890_s13, %s1184_s13   ;;  %s835_s12 = sphi %s888_s12, %s1183_s12  }
   0x8   : > { %p54_p0 = scmp.ne.s32.totalorder %s839_s13, %s835_s12  ;;  %p922_p1 = scmp.eq.s32.totalorder %s476_s18, 0 }
   0x9   : > { %p926_p2 = scmp.eq.s32.totalorder %s476_s18, 1  ;;  %p133_p3 = scmp.eq.s32.totalorder %s477_s19, 1 }
   0xa   : > { %s1170_s20 = scalar_select %p922_p1, 1, 0 }
   0xb   : > { %p932_p4 = por %p922_p1, %p54_p0  ;;  %p478_p5 = scmp.ge.s32.totalorder %s855_s17, 1 }
   0xc   : > { %p937_p6 = por %p133_p3, %p54_p0  ;;  %p140_p7 = scmp.lt.s32.totalorder %s855_s17, 3 }
   0xd   : > { %s1172_s22 = scalar_select %p932_p4, 1, 0 }
   0xe   : > { %s1173_s23 = scalar_select %p937_p6, 1, 0 }
   0xf   : > { %p942_p8 = pnand %p478_p5, %p140_p7  ;;  %s857_s25 = smov [#allocation5]  }
  0x10   : > { %s152_s26 = sshll.u32 %s857_s25, 4  ;;  %s858_s28 = smov [#allocation7]   ;;  %s946_s26 = int_to_ptr.vmem [resolvable:$true] %s152_s26 }
  0x11   : > { %p605_p9 = pneg %p942_p8  ;;  %s168_s29 = sshll.u32 %s858_s28, 4  ;;  %s957_s29 = int_to_ptr.vmem [resolvable:$true] %s168_s29 }
  0x12   : > { %s683_s5 = scalar_lea.hbm %s1163_s1, 2048 }
  0x13   : > { %p953_p11 = pnand %p605_p9, %p922_p1  ;;  %p684_p12 = scmp.ne.s32.totalorder %s1163_s1, %s683_s5 }
  0x14   : > { %p690_p5 = scmp.lt.u32.totalorder %s683_s5, %s1163_s1 }
  0x15   : > { %p685_p13 = pneg %p953_p11 }
  0x17   : > { %p686_p0 = pnand %p685_p13, %p684_p12 }
  0x19   : > { %p687_p3 = pneg %p686_p0 }
  0x1b   : > { %p692_p7 = pnand %p690_p5, %p687_p3 }
  0x1d   : > { %695 = shalt.err (!%p692_p7)
}
  0x1e   : > { %s696_s10 = scalar_lea.vmem %s946_s26, 2048  ;;  %p704_p1 = scmp.lt.s32.totalorder %s946_s26, %s946_s26 }
  0x1f   : > { %p697_p9 = scmp.ne.s32.totalorder %s946_s26, %s696_s10  ;;  %p705_p12 = scmp.lt.s32.totalorder %s696_s10, %s696_s10 }
  0x21   : > { %p699_p10 = pnand %p697_p9, %p685_p13  ;;  %p706_p0 = por %p705_p12, %p704_p1 }
  0x23   : > { %p700_p6 = pneg %p699_p10 }
  0x25   : > { %p707_p4 = pnand %p706_p0, %p700_p6 }
  0x27   : > { %710 = shalt.err (!%p707_p4)
}
  0x28   : > { %s859_s11 = smov 128   ;;  %s860_s18 = smov 8  }
  0x29   : > { %608 = dma.hbm_to_vmem [thread:$0]  (!%p953_p11), %s1163_s1, 2048, %s946_s26, [#allocation6], %s859_s11, %s859_s11, %s860_s18  }
  0x2a   : > { %s711_s4 = scalar_lea.hbm %s1164_s2, 384 }
  0x2b   : > { %p712_p1 = scmp.ne.s32.totalorder %s1164_s2, %s711_s4  ;;  %p718_p10 = scmp.lt.u32.totalorder %s711_s4, %s1164_s2 }
  0x2d   : > { %p714_p4 = pnand %p712_p1, %p685_p13 }
  0x2f   : > { %p715_p6 = pneg %p714_p4 }
  0x31   : > { %p720_p3 = pnand %p718_p10, %p715_p6 }
  0x33   : > { %723 = shalt.err (!%p720_p3)
}
  0x34   : > { %s724_s26 = scalar_lea.vmem %s957_s29, 384  ;;  %p732_p12 = scmp.lt.s32.totalorder %s957_s29, %s957_s29 }
  0x35   : > { %p725_p5 = scmp.ne.s32.totalorder %s957_s29, %s724_s26  ;;  %p733_p0 = scmp.lt.s32.totalorder %s724_s26, %s724_s26 }
  0x37   : > { %p727_p7 = pnand %p725_p5, %p685_p13  ;;  %p734_p1 = por %p733_p0, %p732_p12 }
  0x39   : > { %p728_p9 = pneg %p727_p7 }
  0x3b   : > { %p735_p4 = pnand %p734_p1, %p728_p9 }
  0x3d   : > { %738 = shalt.err (!%p735_p4)
}
  0x3e   : > { %611 = dma.hbm_to_vmem [thread:$0]  (!%p953_p11), %s1164_s2, 384, %s957_s29, [#allocation6], %s859_s11, %s859_s11, %s860_s18  }
  0x3f   : > { %s32_s27 = sadd.s32 1, %s851_s16  ;;  %s41_s19 = sadd.s32 1, %s843_s14 }
  0x40   : > { %p34_p13 = scmp.ge.s32.totalorder %s32_s27, 2  ;;  %p48_p6 = scmp.ne.s32.totalorder %s843_s14, %s839_s13 }
  0x41   : > { %p49_p10 = scmp.eq.s32.totalorder %s855_s17, 0  ;;  %p622_p3 = scmp.lt.s32.totalorder %s855_s17, 2 }
  0x42   : > { %s1189_s27 = smov (%p34_p13, %s32_s27), 0  ;;  %p1027_p7 = por %p926_p2, %p48_p6 }
  0x43   : > { %p50_p5 = por %p49_p10, %p48_p6  ;;  %s36_s28 = ssub.s32 %s851_s16, %s1189_s27 }
  0x44   : > { %s1176_s25 = scalar_select %p1027_p7, 1, 0 }
  0x45   : > { %s182_s30 = sand.u32 1, %s843_s14   ;;  %p39_p9 = scmp.eq.s32.totalorder %s36_s28, 0 }
  0x46   : > { %s589_s29 = smul.u32 24, %s182_s30  ;;  %p1034_p11 = pnand %p622_p3, %p50_p5 }
  0x47   : > { %s1039_s5 = scalar_select %p39_p9, %s843_s14, %s41_s19  }
  0x48   : > { %s590_s6 = smul.u32 384, %s851_s16  ;;  %s186_s7 = scalar_lea.vmem [#allocation2], %s589_s29 }
  0x49   : > { %s195_s8 = sshll.u32 %s186_s7, 4  ;;  %s1049_s10 = scalar_lea.sflag [#allocation3], %s182_s30  ;;  %s1047_s8 = int_to_ptr.vmem [resolvable:$true] %s195_s8 }
  0x4a   : > { %s1045_s9 = scalar_lea.hbm %s1162_s0, %s590_s6  ;;  %p741_p12 = pneg %p1034_p11 }
  0x4b   : > { %s739_s28 = scalar_lea.hbm %s1045_s9, 384  ;;  %s744_s6 = scalar_lea.hbm %s1162_s0, 768 }
  0x4c   : > { %p740_p2 = scmp.ne.s32.totalorder %s1045_s9, %s739_s28  ;;  %p745_p4 = scmp.lt.u32.totalorder %s1045_s9, %s1162_s0 }
  0x4d   : > { %p746_p13 = scmp.lt.u32.totalorder %s744_s6, %s739_s28  ;;  %p748_p10 = scmp.lt.u32.totalorder %s739_s28, %s1045_s9 }
  0x4e   : > { %p742_p0 = pnand %p741_p12, %p740_p2 }
  0x4f   : > { %p747_p6 = por %p746_p13, %p745_p4 }
  0x50   : > { %p743_p1 = pneg %p742_p0 }
  0x51   : > { %p749_p3 = por %p748_p10, %p747_p6 }
  0x53   : > { %p750_p5 = pnand %p749_p3, %p743_p1 }
  0x55   : > { %753 = shalt.err (!%p750_p5)
}
  0x56   : > { %s754_s30 = scalar_lea.vmem %s1047_s8, 384  ;;  %s861_s26 = smov [#allocation2]  }
  0x57   : > { %p755_p9 = scmp.ne.s32.totalorder %s1047_s8, %s754_s30  ;;  %s759_s19 = sshll.u32 %s861_s26, 4  ;;  %s760_s19 = int_to_ptr.vmem [resolvable:$false] %s759_s19 }
  0x58   : > { %s761_s29 = scalar_lea.vmem %s760_s19, 768  ;;  %p762_p7 = scmp.lt.s32.totalorder %s1047_s8, %s760_s19 }
  0x59   : > { %p757_p2 = pnand %p755_p9, %p741_p12  ;;  %p763_p4 = scmp.lt.s32.totalorder %s761_s29, %s754_s30 }
  0x5b   : > { %p758_p0 = pneg %p757_p2  ;;  %p764_p13 = por %p763_p4, %p762_p7 }
  0x5d   : > { %p765_p6 = pnand %p764_p13, %p758_p0 }
  0x5f   : > { %768 = shalt.err (!%p765_p6)
}
  0x60   : > { %615 = dma.hbm_to_vmem [thread:$0]  (!%p1034_p11), %s1045_s9, 384, %s1047_s8, %s1049_s10, %s859_s11, %s859_s11, %s860_s18  }
  0x61   : > { %207 = sbr.rel (%p942_p8) target bundleno = 376 (0x178), region = 32  ;;  %s1083_s28 = sand.u32 (!%p942_p8), 1, %s839_s13  }
  0x62   : > { %s591_s6 = smul.u32 (!%p942_p8), 24, %s1083_s28  ;;  %s210_s7 = scalar_lea.sflag (!%p942_p8), [#allocation3], %s1083_s28 }
  0x63   : > { %p1178_p7 = scmp.ne.s32.totalorder (!%p942_p8), %s1172_s22, 0 }
  0x64   : > { %s1089_s4 = scalar_lea.vmem (!%p942_p8), [#allocation2], %s591_s6 }
  0x68   : > { %822 = dma.done.wait (%p1178_p7), %s210_s7, 384  }
  0x69   : > { %824 = vsyncadd (%p1178_p7), %s210_s7, 4294966912  ;;  %p1179_p11 = scmp.ne.s32.totalorder %s1170_s20, 0 }
  0x6b   : > { %826 = dma.done.wait (%p1179_p11), [#allocation6], 2432  }
  0x6c   : > { %828 = vsyncadd (%p1179_p11), [#allocation6], 4294964864  ;;  %v862_v0 = vmov 0.0|0.0   ;;  %vm863_vm0 = vmmov 0   ;;  %v864_v1 = vmov 0.0   ;;  %v250_v2 = vld [vmem:[#allocation5] sm:$0xff] }
  0x6d   : > { %573 = vmatprep.subr.bf16.mxu1 %v862_v0  ;;  %549 = vmatprep.subr.bf16.mxu0 %v862_v0  ;;  %v251_v3 = vld [vmem:[#allocation5 + $0x8] sm:$0xff]  ;;  %v252_v4 = vld [vmem:[#allocation5 + $0x10] sm:$0xff]  ;;  %v253_v6 = vld [vmem:[#allocation5 + $0x18] sm:$0xff]  ;;  %s243_s20 = scalar_lea.vmem [#allocation8], %s591_s6  ;;  %s592_s24 = smul.u32 384, %s847_s15 }
  0x6e   : > { %543 = vmatprep.mubr.msk.f32.mxu1 %vm863_vm0, %v864_v1  ;;  %540 = vmatprep.mubr.msk.f32.mxu0 %vm863_vm0, %v864_v1  ;;  %v550_v5 = vpack.c.bf16 %v251_v3, %v250_v2  ;;  %v553_v7 = vpack.c.bf16 %v253_v6, %v252_v4  ;;  %v254_v8 = vld [vmem:[#allocation5 + $0x20] sm:$0xff]  ;;  %v255_v9 = vld [vmem:[#allocation5 + $0x28] sm:$0xff]  ;;  %v256_v11 = vld [vmem:[#allocation5 + $0x30] sm:$0xff]  ;;  %s368_s22 = sshll.u32 %s243_s20, 4  ;;  %s353_s15 = scalar_lea.sflag [#allocation4], %s1083_s28  ;;  %s1108_s22 = int_to_ptr.vmem [resolvable:$true] %s368_s22 }
  0x6f   : > { %v556_v10 = vpack.c.bf16 %v255_v9, %v254_v8  ;;  %v257_v12 = vld [vmem:[#allocation5 + $0x38] sm:$0xff]  ;;  %v258_v14 = vld [vmem:[#allocation5 + $0x40] sm:$0xff]  ;;  %v259_v15 = vld [vmem:[#allocation5 + $0x48] sm:$0xff]  ;;  %s1113_s8 = scalar_lea.hbm %s1165_s3, %s592_s24  ;;  %s769_s9 = scalar_lea.vmem %s1108_s22, 384 }
  0x70   : > { %581 = vmatpush3.bf16.msra.mxu1 %v550_v5  ;;  %551 = vmatpush3.bf16.msra.mxu0 %v550_v5  ;;  %v559_v13 = vpack.c.bf16 %v257_v12, %v256_v11  ;;  %v562_v16 = vpack.c.bf16 %v259_v15, %v258_v14  ;;  %v260_v17 = vld [vmem:[#allocation5 + $0x50] sm:$0xff]  ;;  %v261_v18 = vld [vmem:[#allocation5 + $0x58] sm:$0xff]  ;;  %v262_v20 = vld [vmem:[#allocation5 + $0x60] sm:$0xff]  ;;  %p770_p8 = scmp.ne.s32.totalorder %s1108_s22, %s769_s9  ;;  %p1180_p12 = scmp.ne.s32.totalorder %s1176_s25, 0 }
  0x71   : > { %574 = vmatprep.subr.bf16.mxu1 %v862_v0  ;;  %552 = vmatprep.subr.bf16.mxu0 %v862_v0  ;;  %v565_v19 = vpack.c.bf16 %v261_v18, %v260_v17  ;;  %v263_v21 = vld [vmem:[#allocation5 + $0x68] sm:$0xff]  ;;  %v264_v23 = vld [vmem:[#allocation5 + $0x70] sm:$0xff]  ;;  %v265_v24 = vld [vmem:[#allocation5 + $0x78] sm:$0xff]  ;;  %s865_s10 = smov [#allocation8]  }
  0x72   : > { %v568_v22 = vpack.c.bf16 %v263_v21, %v262_v20  ;;  %v571_v25 = vpack.c.bf16 %v265_v24, %v264_v23  ;;  %v248_v26 = vld [vmem:[%s1089_s4 + $0x8] sm:$0xff]  ;;  %v247_v27 = vld [vmem:[%s1089_s4] sm:$0xff]  ;;  %v249_v28 = vld [vmem:[%s1089_s4 + $0x10] sm:$0xff]  ;;  %p771_p1 = pnand %p770_p8, %p1180_p12  ;;  %s773_s21 = sshll.u32 %s865_s10, 4  ;;  %s774_s21 = int_to_ptr.vmem [resolvable:$false] %s773_s21 }
  0x73   : > { %v267_v29 = vld [vmem:[#allocation7 + $0x8] sm:$0xff]  ;;  %v266_v30 = vld [vmem:[#allocation7] sm:$0xff]  ;;  %v268_v37 = vld [vmem:[#allocation7 + $0x10] sm:$0xff]  ;;  %s775_s30 = scalar_lea.vmem %s774_s21, 768  ;;  %p776_p3 = scmp.lt.s32.totalorder %s1108_s22, %s774_s21 }
  0x74   : > { %582 = vmatpush3.bf16.msra.mxu1 %v553_v7  ;;  %554 = vmatpush3.bf16.msra.mxu0 %v553_v7  ;;  %p772_p10 = pneg %p771_p1  ;;  %p777_p5 = scmp.lt.s32.totalorder %s775_s30, %s769_s9 }
  0x75   : > { %575 = vmatprep.subr.bf16.mxu1 %v862_v0  ;;  %555 = vmatprep.subr.bf16.mxu0 %v862_v0 }
  0x76   : > { %p778_p9 = por %p777_p5, %p776_p3 }
  0x78   : > { %583 = vmatpush3.bf16.msra.mxu1 %v556_v10  ;;  %557 = vmatpush3.bf16.msra.mxu0 %v556_v10  ;;  %p779_p2 = pnand %p778_p9, %p772_p10 }
  0x79   : > { %576 = vmatprep.subr.bf16.mxu1 %v862_v0  ;;  %558 = vmatprep.subr.bf16.mxu0 %v862_v0 }
  0x7c   : > { %584 = vmatpush3.bf16.msra.mxu1 %v559_v13  ;;  %560 = vmatpush3.bf16.msra.mxu0 %v559_v13 }
  0x7d   : > { %577 = vmatprep.subr.bf16.mxu1 %v862_v0  ;;  %561 = vmatprep.subr.bf16.mxu0 %v862_v0 }
  0x80   : > { %585 = vmatpush3.bf16.msra.mxu1 %v562_v16  ;;  %563 = vmatpush3.bf16.msra.mxu0 %v562_v16 }
  0x81   : > { %578 = vmatprep.subr.bf16.mxu1 %v862_v0  ;;  %564 = vmatprep.subr.bf16.mxu0 %v862_v0 }
  0x84   : > { %586 = vmatpush3.bf16.msra.mxu1 %v565_v19  ;;  %566 = vmatpush3.bf16.msra.mxu0 %v565_v19 }
  0x85   : > { %579 = vmatprep.subr.bf16.mxu1 %v862_v0  ;;  %567 = vmatprep.subr.bf16.mxu0 %v862_v0 }
  0x88   : > { %587 = vmatpush3.bf16.msra.mxu1 %v568_v22  ;;  %569 = vmatpush3.bf16.msra.mxu0 %v568_v22 }
  0x89   : > { %580 = vmatprep.subr.bf16.mxu1 %v862_v0  ;;  %570 = vmatprep.subr.bf16.mxu0 %v862_v0 }
  0x8c   : > { %588 = vmatpush3.bf16.msra.mxu1 %v571_v25  ;;  %572 = vmatpush3.bf16.msra.mxu0 %v571_v25 }
  0x8f   : > { %544 = vmatmul.mubr.f32.vlgmr.msra.gmra.mrb[0].mxu1 %v248_v26  ;;  %541 = vmatmul.mubr.f32.vlgmr.msra.gmra.mrb[0].mxu0 %v247_v27 }
  0x90   : > { %546 = vmatprep.mubr.msk.f32.mxu1 %vm863_vm0, %v864_v1 }
  0x93   : > { %547 = vmatmul.mubr.f32.gmra.mrb[2].mxu1 %v249_v28 }
 0x162   : > { %v340_v31 = vpop.f32.mrb[0].mxu1  ;;  %v335_v32 = vpop.f32.mrb[0].mxu0 }
 0x163   : > { %v341_v33 = vadd.f32 %v340_v31, %v267_v29  ;;  %v545_v34 = vpop.f32.mrb[1].mxu1  ;;  %v336_v35 = vadd.f32 %v335_v32, %v266_v30  ;;  %v542_v36 = vpop.f32.mrb[1].mxu0 }
 0x165   : > { %350 = vst [vmem:[%s243_s20 + $0x8] sm:$0xff] %v341_v33  ;;  %349 = vst [vmem:[%s243_s20] sm:$0xff] %v336_v35 }
 0x166   : > { %v345_v38 = vpop.f32.mrb[2].mxu1 }
 0x167   : > { %v346_v39 = vadd.f32 %v345_v38, %v268_v37  ;;  %v548_v40 = vpop.f32.mrb[3].mxu1 }
 0x169   : > { %351 = vst [vmem:[%s243_s20 + $0x10] sm:$0xff] %v346_v39 }
 0x16a   : > { %782 = shalt.err (!%p779_p2)
}
 0x16b   : > { %s783_s26 = scalar_lea.hbm %s1113_s8, 384  ;;  %s787_s6 = scalar_lea.hbm %s1165_s3, 768 }
 0x16c   : > { %p784_p0 = scmp.ne.s32.totalorder %s1113_s8, %s783_s26  ;;  %p788_p6 = scmp.lt.u32.totalorder %s1113_s8, %s1165_s3 }
 0x16d   : > { %p789_p7 = scmp.lt.u32.totalorder %s787_s6, %s783_s26  ;;  %p791_p8 = scmp.lt.u32.totalorder %s783_s26, %s1113_s8 }
 0x16e   : > { %p785_p4 = pnand %p784_p0, %p1180_p12 }
 0x16f   : > { %p790_p11 = por %p789_p7, %p788_p6 }
 0x170   : > { %p786_p13 = pneg %p785_p4 }
 0x171   : > { %p792_p1 = por %p791_p8, %p790_p11 }
 0x173   : > { %p793_p10 = pnand %p792_p1, %p786_p13 }
 0x175   : > { %796 = shalt.err (!%p793_p10)
}
 0x176   : > { %s866_s20 = smov 128   ;;  %s867_s24 = smov 8  }
 0x177   : > { %603 = dma.vmem_to_hbm [thread:$0]  (%p1180_p12), %s1108_s22, 384, %s1113_s8, %s353_s15, %s866_s20, %s866_s20, %s867_s24  }
 0x178 PF: > { %s383_s11 = sand.u32 1, %s835_s12   ;;  %p1181_p3 = scmp.ne.s32.totalorder %s1173_s23, 0 }
 0x179   : > { %p1182_p5 = scmp.ge.s32.totalorder %s855_s17, 2  ;;  %s384_s18 = scalar_lea.sflag [#allocation4], %s383_s11 }
 0x17b   : > { %p617_p9 = pnand %p1182_p5, %p1181_p3 }
 0x17d   : > { %830 = dma.done.wait (!%p617_p9), %s384_s18, 384  }
 0x17e   : > { %832 = vsyncadd (!%p617_p9), %s384_s18, 4294966912  ;;  %s20_s17 = sadd.s32 1, %s855_s17   ;;  %s1183_s12 = smov %s839_s13 }
 0x17f   : > { %p17_p2 = scmp.ge.s32.totalorder %s20_s17, 4   ;;  %s1184_s13 = smov %s843_s14 }
 0x180   : > { %s1185_s14 = smov %s1039_s5  ;;  %s1186_s15 = smov %s851_s16 }
 0x181   : > { %s1187_s16 = smov %s1189_s27  ;;  %19 = sbr.rel (!%p17_p2) target bundleno = 7 (0x7), region = 86 }
 0x188   :  { %389 = vsyncpa [#allocation3], 1 }
 0x189   :  { %391 = vsyncpa [#allocation3 + $0x1], 1 }
 0x18a   :  { %392 = vsyncpa [#allocation6], 1 }
 0x18b   :  { %393 = vsyncpa [#allocation4], 1 }
 0x18c   :  { %395 = vsyncpa [#allocation4 + $0x1], 1 }

</bundles_post_ra>
